<compile_context>
chip_gen: v7x
topology: tpu7x:2x2x1
jax: 0.10.0
libtpu: 0.0.40
codegen_flags: <defaults>
</compile_context>

<pallas_src>
import math

import jax
import jax.numpy as jnp
from jax.experimental import pallas as pl
from jax.experimental.pallas import tpu as pltpu


def _cyc_emb_kernel(x_ref, scale_ref, o_ref):
    # x_ref:     VMEM (TILE_N, C, HW)     input rows, native dtype
    # scale_ref: VMEM (1, C, 1)           2*pi / frequency[c]
    # o_ref:     VMEM (TILE_N, C, 2, HW)  [..., 0, :] = sin, [..., 1, :] = cos
    v = x_ref[...].astype(jnp.float32) * scale_ref[...]   # broadcast over rows/lanes
    o_ref[:, :, 0, :] = jnp.sin(v)
    o_ref[:, :, 1, :] = jnp.cos(v)


def _pick_tile_rows(n_rows: int, bytes_per_row: int, target_bytes: int = 2 << 20) -> int:
    """Largest divisor of n_rows whose input tile is <= target_bytes, keeping
    >=2 grid steps when possible (so v7x megacore can shard the parallel axis)."""
    target_rows = max(1, target_bytes // max(1, bytes_per_row))
    cap = n_rows if n_rows < 2 else max(1, n_rows // 2)
    limit = max(1, min(target_rows, cap))
    tile = 1
    for d in range(1, limit + 1):
        if n_rows % d == 0:
            tile = d
    return tile


def cyclical_embedding(time_coords: jax.Array, frequencies) -> jax.Array:
    """time_coords: [B, T, C, H, W] with C == len(frequencies)."""
    B, T, C, H, W = time_coords.shape
    assert C == len(frequencies)
    N, HW = B * T, H * W

    # Lane-dense view: spatial dims flattened into the minor (lane) dim.
    x = time_coords.reshape(N, C, HW)                     # no wrapper dtype cast
    scales = jnp.asarray(
        [2.0 * math.pi / float(f) for f in frequencies], dtype=jnp.float32
    ).reshape(1, C, 1)

    bytes_per_row = C * HW * x.dtype.itemsize
    tile_n = _pick_tile_rows(N, bytes_per_row)
    grid = (N // tile_n,)

    out = pl.pallas_call(
        _cyc_emb_kernel,
        out_shape=jax.ShapeDtypeStruct((N, C, 2, HW), jnp.float32),
        grid=grid,
        in_specs=[
            pl.BlockSpec((tile_n, C, HW), lambda n: (n, 0, 0)),
            pl.BlockSpec((1, C, 1), lambda n: (0, 0, 0)),   # full-extent scales
        ],
        out_specs=pl.BlockSpec((tile_n, C, 2, HW), lambda n: (n, 0, 0, 0)),
        compiler_params=pltpu.CompilerParams(
            dimension_semantics=("parallel",),
            vmem_limit_bytes=32 << 20,
        ),
    )(x, scales)

    # (N, C, 2, HW) -> (B, T, 2*C, H, W): channel layout [sin_0, cos_0, sin_1, ...]
    return out.reshape(B, T, 2 * C, H, W)


if __name__ == "__main__":
    # Small deterministic example consistent with [B, T, C, H, W].
    frequencies = [12.0, 31.0, 24.0]          # e.g. month / day / hour cycles
    B, T, C, H, W = 2, 4, len(frequencies), 16, 16

    key = jax.random.PRNGKey(0)
    time_coords = jax.random.uniform(
        key, (B, T, C, H, W), dtype=jnp.float32, minval=0.0, maxval=31.0
    )

    out = jax.block_until_ready(cyclical_embedding(time_coords, frequencies))

    # Pure-JAX reference check (same math as the PyTorch forward).
    embs = []
    for i, f in enumerate(frequencies):
        embs.append(jnp.sin(2.0 * jnp.pi * time_coords[:, :, i] / f))
        embs.append(jnp.cos(2.0 * jnp.pi * time_coords[:, :, i] / f))
    ref = jnp.stack(embs, axis=2)

    assert out.shape == (B, T, 2 * C, H, W), out.shape
    assert jnp.allclose(out, ref, atol=1e-5, rtol=1e-5), float(
        jnp.max(jnp.abs(out - ref))
    )
    print("KERNEL_OK")
</pallas_src>

<mosaic_0001>
module attributes {stable_mosaic.version = 11 : i64} {
  func.func @_cyc_emb_kernel(%arg0: i32, %arg1: memref<4x3x256xf32, #tpu.memory_space<vmem>>, %arg2: memref<1x3x1xf32, #tpu.memory_space<vmem>>, %arg3: memref<4x3x2x256xf32, #tpu.memory_space<vmem>>) attributes {dimension_semantics = [#tpu.dimension_semantics<parallel>], iteration_bounds = array<i64: 2>, scalar_prefetch = 0 : i64, scratch_operands = 0 : i64, tpu.core_type = #tpu.core_type<tc>, window_params = [{transform_indices = @transform_0, window_bounds = array<i64: 4, 3, 256>}, {pipeline_mode = #tpu.pipeline_mode<synchronous>, transform_indices = @transform_1, window_bounds = array<i64: 1, 3, 1>}, {transform_indices = @transform_2, window_bounds = array<i64: 4, 3, 2, 256>}]} {
    %c0 = arith.constant 0 : index
    %c0_0 = arith.constant 0 : index
    %c0_1 = arith.constant 0 : index
    %0 = vector.load %arg1[%c0, %c0_0, %c0_1] : memref<4x3x256xf32, #tpu.memory_space<vmem>>, vector<4x3x256xf32>
    %c0_2 = arith.constant 0 : index
    %c0_3 = arith.constant 0 : index
    %c0_4 = arith.constant 0 : index
    %1 = vector.load %arg2[%c0_2, %c0_3, %c0_4] : memref<1x3x1xf32, #tpu.memory_space<vmem>>, vector<1x3x1xf32>
    %2 = vector.broadcast %1 : vector<1x3x1xf32> to vector<4x3x256xf32>
    %3 = arith.mulf %0, %2 : vector<4x3x256xf32>
    %4 = math.sin %3 : vector<4x3x256xf32>
    %c0_5 = arith.constant 0 : index
    %c0_6 = arith.constant 0 : index
    %c0_7 = arith.constant 0 : index
    %c0_8 = arith.constant 0 : index
    %5 = vector.load %arg3[%c0_5, %c0_6, %c0_7, %c0_8] : memref<4x3x2x256xf32, #tpu.memory_space<vmem>>, vector<4x3x1x256xf32>
    %6 = vector.shape_cast %5 : vector<4x3x1x256xf32> to vector<4x3x256xf32>
    %7 = vector.shape_cast %4 : vector<4x3x256xf32> to vector<4x3x1x256xf32>
    tpu.vector_store %arg3[%c0_5, %c0_6, %c0_7, %c0_8], %7 {strides = array<i32>} : memref<4x3x2x256xf32, #tpu.memory_space<vmem>>, vector<4x3x1x256xf32>,
    %8 = math.cos %3 : vector<4x3x256xf32>
    %c0_9 = arith.constant 0 : index
    %c0_10 = arith.constant 0 : index
    %c1 = arith.constant 1 : index
    %c0_11 = arith.constant 0 : index
    %9 = vector.load %arg3[%c0_9, %c0_10, %c1, %c0_11] : memref<4x3x2x256xf32, #tpu.memory_space<vmem>>, vector<4x3x1x256xf32>
    %10 = vector.shape_cast %9 : vector<4x3x1x256xf32> to vector<4x3x256xf32>
    %11 = vector.shape_cast %8 : vector<4x3x256xf32> to vector<4x3x1x256xf32>
    tpu.vector_store %arg3[%c0_9, %c0_10, %c1, %c0_11], %11 {strides = array<i32>} : memref<4x3x2x256xf32, #tpu.memory_space<vmem>>, vector<4x3x1x256xf32>,
    return
  }
  func.func @transform_0(%arg0: i32) -> (i32, i32, i32) {
    %c0_i32 = arith.constant 0 : i32
    %c0_i32_0 = arith.constant 0 : i32
    %c0_i32_1 = arith.constant 0 : i32
    return %arg0, %c0_i32, %c0_i32_0 : i32, i32, i32
  }
  func.func @transform_1(%arg0: i32) -> (i32, i32, i32) {
    %c0_i32 = arith.constant 0 : i32
    %c0_i32_0 = arith.constant 0 : i32
    %c0_i32_1 = arith.constant 0 : i32
    %c0_i32_2 = arith.constant 0 : i32
    return %c0_i32, %c0_i32_0, %c0_i32_1 : i32, i32, i32
  }
  func.func @transform_2(%arg0: i32) -> (i32, i32, i32, i32) {
    %c0_i32 = arith.constant 0 : i32
    %c0_i32_0 = arith.constant 0 : i32
    %c0_i32_1 = arith.constant 0 : i32
    %c0_i32_2 = arith.constant 0 : i32
    return %arg0, %c0_i32, %c0_i32_0, %c0_i32_1 : i32, i32, i32, i32
  }
}

</mosaic_0001>

<bundles_post_ra>
// kernel: tpu_custom_call.1
= control target key start
LH: loop header
LB: loop body
LE: loop exit
PB: predicated region body
PF: predicated region fallthrough
CT: control target
= control target key end

     0   :  { %7 = vsyncpa [#allocation3], 0  ;;  %s2165_s0 = inlined_call_operand.vmem [shape: f32[8,3,256], index: 0, kind: input, shape index: {}]   ;;  %s2166_s1 = inlined_call_operand.vmem [shape: f32[1,3,1], index: 1, kind: input, shape index: {}]   ;;  %s2167_s2 = inlined_call_operand.hbm [shape: f32[8,3,2,256], index: 2, kind: output, shape index: {}]  }
   0x1   :  { %9 = vsyncpa [#allocation3 + $0x1], 0  ;;  %s1585_s9 = smov 0   ;;  %s1587_s10 = smov 0  }
   0x2   :  { %s1589_s11 = smov 0   ;;  %s1591_s12 = smov 0  }
   0x3 LB: > { %s1606_s13 = sadd.s32 4294967295, %s1556_s12   ;;  %s1341_s14 = sadd.s32 4294967294, %s1556_s12   ;;  %s1556_s12 = sphi %s1591_s12, %s2181_s12   ;;  %s1552_s11 = sphi %s1589_s11, %s2180_s11   ;;  %s1548_s10 = sphi %s1587_s10, %s2179_s10   ;;  %s1544_s9 = sphi %s1585_s9, %s2178_s9  }
   0x4   : > { %s1610_s15 = sadd.s32 1, %s1556_s12   ;;  %s69_s16 = sadd.s32 1, %s1552_s11 }
   0x5   : > { %s66_s17 = ssub.s32 %s1556_s12, %s1610_s15  ;;  %p79_p0 = scmp.ne.s32.totalorder %s1552_s11, %s1548_s10 }
   0x6   : > { %p67_p1 = scmp.eq.s32.totalorder %s66_s17, 0  ;;  %p80_p2 = scmp.eq.s32.totalorder %s1606_s13, 1 }
   0x7   : > { %p85_p3 = scmp.ne.s32.totalorder %s1548_s10, %s1544_s9  ;;  %p86_p4 = scmp.eq.s32.totalorder %s1341_s14, 1 }
   0x8   : > { %s1621_s18 = scalar_select %p67_p1, %s1552_s11, %s69_s16  }
   0x9   : > { %p1623_p5 = por %p80_p2, %p79_p0  ;;  %p1627_p6 = por %p86_p4, %p85_p3 }
   0xa   : > { %p1344_p7 = scmp.ge.s32.totalorder %s1556_s12, 1  ;;  %p117_p8 = scmp.lt.s32.totalorder %s1556_s12, 3 }
   0xc   : > { %p118_p9 = pnand %p1344_p7, %p117_p8 }
   0xd   : > { %v152_v0 = vld [vmem:[%s2166_s1] sm:$0x7] (!%p118_p9)  ;;  %v1558_v1 = vmov (!%p118_p9), 0   ;;  %s1345_s23 = sshll.u32 (!%p118_p9), %s1606_s13, 2  ;;  %v1559_v2 = vmov (!%p118_p9), 839922192   ;;  %v160_v4 = vlaneseq (!%p118_p9) }
   0xe   : > { %121 = sbr.rel (%p118_p9) target bundleno = 305 (0x131), region = 28  ;;  %1477 = vset.pattern.permute.xlu0 (!%p118_p9), %v1558_v1  ;;  %p141_p10 = scmp.lt.s32.totalorder (!%p118_p9), %s1345_s23, 7  ;;  %v158_v3 = vunpack.c.l.s4 (!%p118_p9), %v1559_v2  ;;  %v1560_v46 = vmov (!%p118_p9), 683565275   ;;  %v1561_v50 = vmov (!%p118_p9), 2475754826  }
   0xf   : > { %155 = vperm.xlu0 (!%p118_p9), %1477, %v152_v0   ;;  %v1638_v6 = vshrl.u32 (!%p118_p9), %v160_v4, 7  ;;  %v1562_v52 = vmov (!%p118_p9), 2131351028   ;;  %v1563_v54 = vmov (!%p118_p9), 2102212464   ;;  %s137_s28 = sand.u32 (!%p118_p9), 1, %s1548_s10  }
  0x10   : > { %v159_v5 = vunpack.c.0.s8 (!%p118_p9), %v158_v3  ;;  %v1564_v56 = vmov (!%p118_p9), 920167782   ;;  %v1565_v63 = vmov (!%p118_p9), 1326507024   ;;  %s1954_s29 = smul.u32 (!%p118_p9), 48, %s137_s28  ;;  %s2124_s8 = scalar_lea.sflag (!%p118_p9), [#allocation3], %s137_s28 }
  0x11   : > { %s1426_s3 = smul.u32 (!%p118_p9), 768, %s1606_s13  ;;  %s1567_s14 = smov (!%p118_p9), [#allocation2]  }
  0x12   : > { %v162_v7 = vsub.s32 (!%p118_p9), %v159_v5, %v1638_v6  ;;  %s1987_s30 = scalar_lea.vmem (!%p118_p9), [#allocation2], %s1954_s29  ;;  %s1498_s16 = sshll.u32 (!%p118_p9), %s1567_s14, 4  ;;  %s1499_s16 = int_to_ptr.vmem [resolvable:$false] %s1498_s16 }
  0x13   : > { %s1279_s4 = sshll.u32 (!%p118_p9), %s1987_s30, 4  ;;  %s2098_s7 = scalar_lea.hbm (!%p118_p9), %s2167_s2, %s1426_s3  ;;  %s2108_s4 = int_to_ptr.vmem [resolvable:$true] %s1279_s4 }
  0x14   : > { %s1494_s13 = scalar_lea.vmem (!%p118_p9), %s2108_s4, 768  ;;  %s1500_s17 = scalar_lea.vmem (!%p118_p9), %s1499_s16, 1536 }
  0x15   : > { %s2183_s23 = smov (!%p141_p10, %s1345_s23), 7  ;;  %p1495_p11 = scmp.ne.s32.totalorder %s2108_s4, %s1494_s13 }
  0x16   : > { %s1408_s24 = sshll.u32 %s2183_s23, 3  ;;  %p1501_p0 = scmp.lt.s32.totalorder %s2108_s4, %s1499_s16 }
  0x17   : > { %s145_s27 = scalar_lea.vmem %s2165_s0, %s1408_s24  ;;  %p1496_p12 = pnand %p1495_p11, %p1623_p5 }
  0x18   : > { %v148_v9 = vld [vmem:[%s145_s27] sm:$0x77]  ;;  %v149_v10 = vld [vmem:[%s145_s27 + $0x8] sm:$0x77]  ;;  %v150_v11 = vld [vmem:[%s145_s27 + $0x10] sm:$0x77]  ;;  %p1502_p1 = scmp.lt.s32.totalorder %s1500_s17, %s1494_s13 }
  0x19   : > { %v151_v22 = vld [vmem:[%s145_s27 + $0x18] sm:$0x77]  ;;  %p1497_p13 = pneg %p1496_p12 }
  0x1a   : > { %p1503_p2 = por %p1502_p1, %p1501_p0 }
  0x1c   : > { %p1504_p3 = pnand %p1503_p2, %p1497_p13 }
  0x8e   : > { %v156_v8 = vpop.permute.xlu0 %155 }
  0x8f   : > { %v163_v12 = vrot.slane %v156_v8, %v162_v7 }
  0x91   : > { %v1644_v13 = vmul.f32 %v163_v12, %v148_v9  ;;  %v1646_v14 = vmul.f32 %v163_v12, %v149_v10  ;;  %v1648_v15 = vmul.f32 %v163_v12, %v150_v11  ;;  %v1659_v29 = vmul.f32 %v163_v12, %v151_v22 }
  0x93   : > { %v169_v16 = vand.u32 2147483647, %v1644_v13  ;;  %v172_v17 = vand.u32 2139095040, %v1644_v13  ;;  %v273_v18 = vand.u32 2147483647, %v1646_v14  ;;  %v276_v19 = vand.u32 2139095040, %v1646_v14 }
  0x94   : > { %v380_v25 = vand.u32 2139095040, %v1648_v15  ;;  %v377_v34 = vand.u32 2147483647, %v1648_v15  ;;  %v484_v44 = vand.u32 2139095040, %v1659_v29  ;;  %vm171_vm13 = vcmp.lt.s32.totalorder %v1644_v13, 0 }
  0x95   : > { %v173_v20 = vshrl.u32 %v172_v17, 23  ;;  %v176_v21 = vand.u32 8388607, %v169_v16  ;;  %v277_v23 = vshrl.u32 %v276_v19, 23  ;;  %v280_v24 = vand.u32 8388607, %v273_v18 }
  0x96   : > { %v381_v28 = vshrl.u32 %v380_v25, 23  ;;  %v1668_v42 = vand.u32 8388607, %v377_v34  ;;  %vm1758_vm14 = vcmp.le.f32.partialorder %v169_v16, 0.7853982 }
  0x97   : > { %v1348_v26 = vadd.s32 4294967169, %v173_v20  ;;  %v1352_v27 = vadd.s32 4294967169, %v277_v23  ;;  %v177_v30 = vor.u32 8388608, %v176_v21  ;;  %v281_v32 = vor.u32 8388608, %v280_v24 }
  0x98   : > { %v1356_v35 = vadd.s32 4294967169, %v381_v28 }
  0x99   : > { %v179_v31 = vadd.s32 1, %v1348_v26  ;;  %v283_v33 = vadd.s32 1, %v1352_v27  ;;  %v1662_v39 = vshll.u32 %v177_v30, 8  ;;  %v1664_v41 = vshll.u32 %v281_v32, 8 }
  0x9a   : > { %v1670_v43 = vadd.s32 1, %v1356_v35 }
  0x9b   : > { %vm180_vm0 = vcmp.gt.s32.totalorder %v179_v31, 0  ;;  %vm284_vm1 = vcmp.gt.s32.totalorder %v283_v33, 0 }
  0x9c   : > { %v181_v36 = vsel %vm180_vm0, %v179_v31, 0  ;;  %v285_v40 = vsel %vm284_vm1, %v283_v33, 0  ;;  %vm388_vm6 = vcmp.gt.s32.totalorder %v1670_v43, 0 }
  0x9d   : > { %v182_v37 = vshrl.u32 %v181_v36, 5  ;;  %v183_v38 = vand.u32 31, %v181_v36  ;;  %v1674_v48 = vshrl.u32 %v285_v40, 5  ;;  %v287_v49 = vand.u32 31, %v285_v40 }
  0x9f   : > { %v184_v45 = vsub.s32 32, %v183_v38  ;;  %v186_v47 = vshll.u32 %v1560_v46, %v183_v38  ;;  %v189_v51 = vshll.u32 %v1561_v50, %v183_v38  ;;  %v192_v53 = vshll.u32 %v1562_v52, %v183_v38 }
  0xa0   : > { %v195_v55 = vshll.u32 %v1563_v54, %v183_v38  ;;  %v198_v57 = vshll.u32 %v1564_v56, %v183_v38  ;;  %vm201_vm2 = vcmp.lt.s32.totalorder %v182_v37, 1  ;;  %vm202_vm3 = vcmp.lt.s32.totalorder %v182_v37, 2 }
  0xa1   : > { %v187_v58 = vshrl.u32 %v1561_v50, %v184_v45  ;;  %v190_v59 = vshrl.u32 %v1562_v52, %v184_v45  ;;  %v193_v60 = vshrl.u32 %v1563_v54, %v184_v45  ;;  %v185_v61 = vshrl.u32 %v1560_v46, %v184_v45 }
  0xa2   : > { %v196_v62 = vshrl.u32 %v1564_v56, %v184_v45  ;;  %v199_v0 = vshrl.u32 %v1565_v63, %v184_v45  ;;  %v288_v5 = vsub.s32 32, %v287_v49  ;;  %vm203_vm4 = vcmp.lt.s32.totalorder %v182_v37, 3 }
  0xa3   : > { %v188_v1 = vor.u32 %v187_v58, %v186_v47  ;;  %v191_v2 = vor.u32 %v190_v59, %v189_v51  ;;  %v194_v3 = vor.u32 %v193_v60, %v192_v53  ;;  %vm204_vm5 = vcmp.lt.s32.totalorder %v182_v37, 4 }
  0xa4   : > { %v197_v7 = vor.u32 %v196_v62, %v195_v55  ;;  %v200_v8 = vor.u32 %v199_v0, %v198_v57  ;;  %v290_v21 = vshll.u32 %v1560_v46, %v287_v49  ;;  %v291_v24 = vshrl.u32 %v1561_v50, %v288_v5 }
  0xa5   : > { %v205_v9 = vsel %vm201_vm2, %v185_v61, %v188_v1  ;;  %v206_v10 = vsel %vm204_vm5, %v194_v3, 2102212464  ;;  %v209_v11 = vsel %vm201_vm2, %v188_v1, %v191_v2  ;;  %v213_v12 = vsel %vm201_vm2, %v191_v2, %v194_v3 }
  0xa6   : > { %v207_v17 = vsel %vm203_vm4, %v191_v2, %v206_v10  ;;  %v210_v19 = vsel %vm204_vm5, %v197_v7, 920167782  ;;  %v214_v20 = vsel %vm204_vm5, %v200_v8, 1326507024  ;;  %v293_v25 = vshll.u32 %v1561_v50, %v287_v49 }
  0xa7   : > { %v211_v22 = vsel %vm203_vm4, %v194_v3, %v210_v19  ;;  %v215_v23 = vsel %vm203_vm4, %v197_v7, %v214_v20  ;;  %v208_v26 = vsel %vm202_vm3, %v205_v9, %v207_v17  ;;  %v294_v30 = vshrl.u32 %v1562_v52, %v288_v5 }
  0xa8   : > { %v212_v27 = vsel %vm202_vm3, %v209_v11, %v211_v22  ;;  %v216_v28 = vsel %vm202_vm3, %v213_v12, %v215_v23  ;;  %v292_v36 = vor.u32 %v291_v24, %v290_v21  ;;  %v296_v40 = vshll.u32 %v1562_v52, %v287_v49 }
  0xa9   : > { %v1698_v31 = vmul.u32.u64.low %v1662_v39, %v216_v28  ;;  %v1699_v32 = vmul.u32.u64.high %v1662_v39, %v216_v28, %v1698_v31  ;;  %v1702_v33 = vmul.u32.u64.low %v1662_v39, %v212_v27  ;;  %v1703_v35 = vmul.u32.u64.high %v1662_v39, %v212_v27, %v1702_v33 }
  0xaa   : > { %v295_v38 = vor.u32 %v294_v30, %v293_v25  ;;  %v297_v45 = vshrl.u32 %v1563_v54, %v288_v5  ;;  %v289_v47 = vshrl.u32 %v1560_v46, %v288_v5  ;;  %v299_v37 = vshll.u32 %v1563_v54, %v287_v49 }
  0xab   : > { %v300_v51 = vshrl.u32 %v1564_v56, %v288_v5  ;;  %v303_v53 = vshrl.u32 %v1565_v63, %v288_v5  ;;  %v224_v55 = vmul.u32 %v1662_v39, %v208_v26  ;;  %v302_v58 = vshll.u32 %v1564_v56, %v287_v49 }
  0xac   : > { %v298_v57 = vor.u32 %v297_v45, %v296_v40  ;;  %vm305_vm7 = vcmp.lt.s32.totalorder %v1674_v48, 1  ;;  %vm226_vm8 = vc.u32 %v1699_v32, %v1702_v33  ;;  %v227_v59 = vadd.s32 1, %v1703_v35 }
  0xad   : > { %v301_v60 = vor.u32 %v300_v51, %v299_v37  ;;  %vm306_vm9 = vcmp.lt.s32.totalorder %v1674_v48, 2  ;;  %v304_v61 = vor.u32 %v303_v53, %v302_v58  ;;  %vm307_vm10 = vcmp.lt.s32.totalorder %v1674_v48, 3 }
  0xae   : > { %vm308_vm11 = vcmp.lt.s32.totalorder %v1674_v48, 4  ;;  %v313_v62 = vsel %vm305_vm7, %v292_v36, %v295_v38  ;;  %v228_v39 = vsel %vm226_vm8, %v227_v59, %v1703_v35  ;;  %v317_v49 = vsel %vm305_vm7, %v295_v38, %v298_v57 }
  0xaf   : > { %v310_v0 = vsel %vm308_vm11, %v298_v57, 2102212464  ;;  %v314_v1 = vsel %vm308_vm11, %v301_v60, 920167782  ;;  %v229_v2 = vadd.s32 %v228_v39, %v224_v55  ;;  %v309_v3 = vsel %vm305_vm7, %v289_v47, %v292_v36 }
  0xb0   : > { %v315_v5 = vsel %vm307_vm10, %v298_v57, %v314_v1  ;;  %v318_v7 = vsel %vm308_vm11, %v304_v61, 1326507024  ;;  %v311_v8 = vsel %vm307_vm10, %v295_v38, %v310_v0  ;;  %v389_v11 = vsel %vm388_vm6, %v1670_v43, 0 }
  0xb1   : > { %v316_v9 = vsel %vm306_vm9, %v313_v62, %v315_v5  ;;  %v319_v10 = vsel %vm307_vm10, %v301_v60, %v318_v7  ;;  %v230_v12 = vadd.s32 536870912, %v229_v2  ;;  %v481_v23 = vand.u32 2147483647, %v1659_v29 }
  0xb2   : > { %v320_v17 = vsel %vm306_vm9, %v317_v49, %v319_v10  ;;  %v1728_v19 = vmul.u32.u64.low %v1664_v41, %v316_v9  ;;  %v1729_v20 = vmul.u32.u64.high %v1664_v41, %v316_v9, %v1728_v19  ;;  %v312_v25 = vsel %vm306_vm9, %v309_v3, %v311_v8 }
  0xb3   : > { %v1733_v21 = vmul.u32.u64.low %v1664_v41, %v320_v17  ;;  %v1734_v22 = vmul.u32.u64.high %v1664_v41, %v320_v17, %v1733_v21  ;;  %v231_v24 = vshrl.u32 %v230_v12, 30  ;;  %v385_v43 = vor.u32 8388608, %v1668_v42 }
  0xb4   : > { %v391_v26 = vand.u32 31, %v389_v11  ;;  %v331_v28 = vadd.s32 1, %v1729_v20  ;;  %v485_v31 = vshrl.u32 %v484_v44, 23  ;;  %v328_v35 = vmul.u32 %v1664_v41, %v312_v25 }
  0xb5   : > { %v232_v27 = vshll.u32 %v231_v24, 30  ;;  %vm330_vm12 = vc.u32 %v1734_v22, %v1728_v19  ;;  %v1748_v36 = vand.u32 8388607, %v481_v23  ;;  %v1754_v38 = vshll.u32 %v385_v43, 8 }
  0xb6   : > { %v392_v30 = vsub.s32 32, %v391_v26  ;;  %v332_v48 = vsel %vm330_vm12, %v331_v28, %v1729_v20  ;;  %v225_v41 = vadd.s32 %v1702_v33, %v1699_v32  ;;  %v1763_v45 = vshrl.u32 %v389_v11, 5 }
  0xb7   : > { %v1751_v42 = vsub.s32 %v229_v2, %v232_v27  ;;  %v333_v40 = vadd.s32 %v332_v48, %v328_v35  ;;  %v1360_v55 = vadd.s32 4294967169, %v485_v31  ;;  %v255_v57 = vsub.s32 4, %v231_v24 }
  0xb8   : > { %v395_v47 = vshrl.u32 %v1561_v50, %v392_v30  ;;  %v398_v51 = vshrl.u32 %v1562_v52, %v392_v30  ;;  %v401_v53 = vshrl.u32 %v1563_v54, %v392_v30  ;;  %v394_v16 = vshll.u32 %v1560_v46, %v391_v26 }
  0xb9   : > { %v235_v37 = vsub.s32 0, %v1751_v42  ;;  %v334_v58 = vadd.s32 536870912, %v333_v40  ;;  %v489_v59 = vor.u32 8388608, %v1748_v36  ;;  %v397_v33 = vshll.u32 %v1561_v50, %v391_v26 }
  0xba   : > { %v400_v60 = vshll.u32 %v1562_v52, %v391_v26  ;;  %v404_v61 = vshrl.u32 %v1564_v56, %v392_v30  ;;  %v396_v39 = vor.u32 %v395_v47, %v394_v16  ;;  %v403_v0 = vshll.u32 %v1563_v54, %v391_v26 }
  0xbb   : > { %v1349_v32 = vmin.u32 %v235_v37, %v1751_v42  ;;  %v335_v62 = vshrl.u32 %v334_v58, 30  ;;  %v407_v1 = vshrl.u32 %v1565_v63, %v392_v30  ;;  %v399_v2 = vor.u32 %v398_v51, %v397_v33 }
  0xbc   : > { %v402_v3 = vor.u32 %v401_v53, %v400_v60  ;;  %v406_v5 = vshll.u32 %v1564_v56, %v391_v26  ;;  %v256_v7 = vsel %vm171_vm13, %v255_v57, %v231_v24  ;;  %v405_v9 = vor.u32 %v404_v61, %v403_v0 }
  0xbd   : > { %v237_v49 = vclz %v1349_v32  ;;  %v336_v8 = vshll.u32 %v335_v62, 30  ;;  %vm409_vm15 = vcmp.lt.s32.totalorder %v1763_v45, 1  ;;  %vm410_vm0 = vcmp.lt.s32.totalorder %v1763_v45, 2 }
  0xbe   : > { %v408_v11 = vor.u32 %v407_v1, %v406_v5  ;;  %vm412_vm1 = vcmp.lt.s32.totalorder %v1763_v45, 4  ;;  %vm275_vm2 = vcmp.lt.s32.totalorder %v1646_v14, 0  ;;  %v393_v17 = vshrl.u32 %v1560_v46, %v392_v30 }
  0xbf   : > { %v1350_v10 = vadd.s32 4294967294, %v237_v49  ;;  %v1784_v12 = vsub.s32 %v333_v40, %v336_v8  ;;  %vm411_vm3 = vcmp.lt.s32.totalorder %v1763_v45, 3  ;;  %v418_v20 = vsel %vm412_vm1, %v405_v9, 920167782 }
  0xc0   : > { %v1792_v21 = vsel %vm1758_vm14, 0, %v256_v7  ;;  %v417_v24 = vsel %vm409_vm15, %v396_v39, %v399_v2  ;;  %v419_v25 = vsel %vm411_vm3, %v402_v3, %v418_v20  ;;  %v359_v27 = vsub.s32 4, %v335_v62 }
  0xc1   : > { %vm1351_vm4 = vcmp.lt.s32.totalorder %v1350_v10, 0  ;;  %v339_v26 = vsub.s32 0, %v1784_v12  ;;  %v421_v28 = vsel %vm409_vm15, %v399_v2, %v402_v3  ;;  %vm1803_vm5 = vcmp.le.f32.partialorder %v273_v18, 0.7853982 }
  0xc2   : > { %v240_v43 = vsel %vm1351_vm4, 0, %v1350_v10  ;;  %v414_v48 = vsel %vm412_vm1, %v402_v3, 2102212464  ;;  %v422_v40 = vsel %vm412_vm1, %v408_v11, 1326507024  ;;  %v420_v51 = vsel %vm410_vm0, %v417_v24, %v419_v25 }
  0xc3   : > { %v241_v30 = vsub.s32 32, %v240_v43  ;;  %v245_v31 = vsub.s32 4294967266, %v240_v43  ;;  %v242_v47 = vshll.u32 %v1751_v42, %v240_v43  ;;  %v1353_v37 = vmin.u32 %v339_v26, %v1784_v12 }
  0xc4   : > { %v423_v53 = vsel %vm411_vm3, %v405_v9, %v422_v40  ;;  %v491_v16 = vadd.s32 1, %v1360_v55  ;;  %v262_v32 = vadd.s32 3, %v1792_v21  ;;  %v413_v42 = vsel %vm409_vm15, %v393_v17, %v396_v39 }
  0xc5   : > { %v243_v18 = vshrl.u32 %v225_v41, %v241_v30  ;;  %v246_v57 = vadd.s32 127, %v245_v31  ;;  %v424_v58 = vsel %vm410_vm0, %v421_v28, %v423_v53  ;;  %v341_v33 = vclz %v1353_v37 }
  0xc6   : > { %v415_v60 = vsel %vm411_vm3, %v399_v2, %v414_v48  ;;  %v1825_v1 = vmul.u32.u64.low %v1754_v38, %v424_v58  ;;  %v1826_v49 = vmul.u32.u64.high %v1754_v38, %v424_v58, %v1825_v1  ;;  %vm492_vm6 = vcmp.gt.s32.totalorder %v491_v16, 0 }
  0xc7   : > { %v244_v61 = vor.u32 %v243_v18, %v242_v47  ;;  %v247_v0 = vshll.u32 %v246_v57, 23  ;;  %v1354_v41 = vadd.s32 4294967294, %v341_v33  ;;  %v329_v39 = vadd.s32 %v1728_v19, %v1734_v22 }
  0xc8   : > { %v1829_v3 = vmul.u32.u64.low %v1754_v38, %v420_v51  ;;  %v1830_v5 = vmul.u32.u64.high %v1754_v38, %v420_v51, %v1829_v3  ;;  %v360_v2 = vsel %vm275_vm2, %v359_v27, %v335_v62  ;;  %v493_v7 = vsel %vm492_vm6, %v491_v16, 0 }
  0xc9   : > { %v248_v55 = vor.u32 4788187, %v247_v0  ;;  %v1837_v8 = vand.u32 3, %v262_v32  ;;  %vm1355_vm7 = vcmp.lt.s32.totalorder %v1354_v41, 0  ;;  %v416_v9 = vsel %vm410_vm0, %v413_v42, %v415_v60 }
  0xca   : > { %v495_v10 = vand.u32 31, %v493_v7  ;;  %v251_v17 = vcvt.s32.f32 %v244_v61  ;;  %v344_v20 = vsel %vm1355_vm7, 0, %v1354_v41  ;;  %vm434_vm8 = vc.u32 %v1826_v49, %v1829_v3 }
  0xcb   : > { %v249_v11 = vand.u32 2147483647, %v248_v55  ;;  %v345_v24 = vsub.s32 32, %v344_v20  ;;  %v349_v25 = vsub.s32 4294967266, %v344_v20  ;;  %v1845_v19 = vsel %vm1803_vm5, 0, %v360_v2 }
  0xcc   : > { %v435_v22 = vadd.s32 1, %v1830_v5  ;;  %v432_v43 = vmul.u32 %v1754_v38, %v416_v9  ;;  %v1849_v45 = vshrl.u32 %v493_v7, 5  ;;  %v496_v26 = vsub.s32 32, %v495_v10 }
  0xcd   : > { %v252_v62 = vmul.f32 %v251_v17, %v249_v11  ;;  %v346_v27 = vshll.u32 %v1784_v12, %v344_v20  ;;  %v347_v28 = vshrl.u32 %v329_v39, %v345_v24  ;;  %v350_v30 = vadd.s32 127, %v349_v25 }
  0xce   : > { %v436_v31 = vsel %vm434_vm8, %v435_v22, %v1830_v5  ;;  %v498_v47 = vshll.u32 %v1560_v46, %v495_v10  ;;  %v499_v37 = vshrl.u32 %v1561_v50, %v496_v26  ;;  %v501_v18 = vshll.u32 %v1561_v50, %v495_v10 }
  0xcf   : > { %v253_v48 = vxor.u32 2147483648, %v252_v62  ;;  %v437_v40 = vadd.s32 %v436_v31, %v432_v43  ;;  %v348_v51 = vor.u32 %v347_v28, %v346_v27  ;;  %v351_v53 = vshll.u32 %v350_v30, 23 }
  0xd0   : > { %v502_v38 = vshrl.u32 %v1562_v52, %v496_v26  ;;  %v504_v58 = vshll.u32 %v1562_v52, %v495_v10  ;;  %v505_v16 = vshrl.u32 %v1563_v54, %v496_v26  ;;  %v500_v42 = vor.u32 %v499_v37, %v498_v47 }
  0xd1   : > { %v254_v57 = vsel %vm171_vm13, %v253_v48, %v252_v62  ;;  %v438_v12 = vadd.s32 536870912, %v437_v40  ;;  %v352_v33 = vor.u32 4788187, %v351_v53  ;;  %v507_v60 = vshll.u32 %v1563_v54, %v495_v10 }
  0xd2   : > { %v257_v32 = vsel %vm1758_vm14, %v1644_v13, %v254_v57  ;;  %v355_v50 = vcvt.s32.f32 %v348_v51  ;;  %v508_v0 = vshrl.u32 %v1564_v56, %v496_v26  ;;  %v503_v41 = vor.u32 %v502_v38, %v501_v18 }
  0xd3   : > { %1478 = vcosq.f32 %v257_v32  ;;  %v1865_v61 = vshrl.u32 %v438_v12, 30  ;;  %v353_v1 = vand.u32 2147483647, %v352_v33  ;;  %v511_v52 = vshrl.u32 %v1565_v63, %v496_v26 }
  0xd4   : > { %1480 = vsinq.f32 %v257_v32  ;;  %v509_v55 = vor.u32 %v508_v0, %v507_v60  ;;  %v506_v39 = vor.u32 %v505_v16, %v504_v58  ;;  %v510_v2 = vshll.u32 %v1564_v56, %v495_v10 }
  0xd5   : > { %v440_v5 = vshll.u32 %v1865_v61, 30  ;;  %v356_v44 = vmul.f32 %v355_v50, %v353_v1  ;;  %v366_v54 = vadd.s32 3, %v1845_v19  ;;  %vm513_vm9 = vcmp.lt.s32.totalorder %v1849_v45, 1 }
  0xd6   : > { %v1877_v9 = vshll.u32 %v489_v59, 8  ;;  %vm265_vm10 = vcmp.eq.s32.totalorder %v1837_v8, 0  ;;  %v512_v11 = vor.u32 %v511_v52, %v510_v2  ;;  %vm516_vm11 = vcmp.lt.s32.totalorder %v1849_v45, 4 }
  0xd7   : > { %v1872_v7 = vsub.s32 %v437_v40, %v440_v5  ;;  %v357_v63 = vxor.u32 2147483648, %v356_v44  ;;  %v521_v17 = vsel %vm513_vm9, %v500_v42, %v503_v41  ;;  %vm264_vm12 = vcmp.lt.s32.totalorder %v1837_v8, 2 }
  0xd8   : > { %v497_v10 = vshrl.u32 %v1560_v46, %v496_v26  ;;  %vm515_vm13 = vcmp.lt.s32.totalorder %v1849_v45, 3  ;;  %v522_v36 = vsel %vm516_vm11, %v509_v55, 920167782  ;;  %vm514_vm14 = vcmp.lt.s32.totalorder %v1849_v45, 2 }
  0xd9   : > { %v443_v56 = vsub.s32 0, %v1872_v7  ;;  %v358_v59 = vsel %vm275_vm2, %v357_v63, %v356_v44  ;;  %v518_v20 = vsel %vm516_vm11, %v506_v39, 2102212464  ;;  %v523_v24 = vsel %vm515_vm13, %v506_v39, %v522_v36 }
  0xda   : > { %vm261_vm15 = vweird.f32 %v1644_v13  ;;  %v361_v46 = vsel %vm1803_vm5, %v1646_v14, %v358_v59  ;;  %v524_v22 = vsel %vm514_vm14, %v521_v17, %v523_v24  ;;  %v525_v62 = vsel %vm513_vm9, %v503_v41, %v506_v39 }
  0xdb   : > { %v1357_v25 = vmin.u32 %v443_v56, %v1872_v7  ;;  %1482 = vcosq.f32 %v361_v46  ;;  %v526_v43 = vsel %vm516_vm11, %v512_v11, 1326507024  ;;  %v517_v30 = vsel %vm513_vm9, %v497_v10, %v500_v42 }
  0xdc   : > { %v1908_v26 = vmul.u32.u64.low %v1877_v9, %v524_v22  ;;  %v1909_v27 = vmul.u32.u64.high %v1877_v9, %v524_v22, %v1908_v26  ;;  %1484 = vsinq.f32 %v361_v46  ;;  %v519_v31 = vsel %vm515_vm13, %v503_v41, %v518_v20 }
  0xdd   : > { %v1912_v28 = vpop.eup %1478  ;;  %v445_v35 = vclz %v1357_v25  ;;  %vm268_vm0 = vcmp.eq.s32.totalorder %v1837_v8, 2  ;;  %v367_v47 = vand.u32 3, %v366_v54  ;;  %v527_v37 = vsel %vm515_vm13, %v509_v55, %v526_v43 }
  0xde   : > { %v1918_v48 = vpop.eup %1480  ;;  %v269_v40 = vxor.u32 2147483648, %v1912_v28  ;;  %v528_v18 = vsel %vm514_vm14, %v525_v62, %v527_v37  ;;  %v520_v57 = vsel %vm514_vm14, %v517_v30, %v519_v31  ;;  %v539_v32 = vadd.s32 1, %v1909_v27 }
  0xdf   : > { %v266_v51 = vxor.u32 2147483648, %v1918_v48  ;;  %v1358_v53 = vadd.s32 4294967294, %v445_v35  ;;  %v1933_v12 = vmul.u32.u64.low %v1877_v9, %v528_v18  ;;  %v1934_v58 = vmul.u32.u64.high %v1877_v9, %v528_v18, %v1933_v12 }
  0xe0   : > { %v270_v38 = vsel %vm268_vm0, %v269_v40, %v1918_v48  ;;  %v1566_v33 = vmov 1966171168   ;;  %vm368_vm2 = vcmp.lt.s32.totalorder %v367_v47, 2  ;;  %vm369_vm3 = vcmp.eq.s32.totalorder %v367_v47, 0 }
  0xe1   : > { %v267_v16 = vsel %vm265_vm10, %v1912_v28, %v266_v51  ;;  %vm1359_vm1 = vcmp.lt.s32.totalorder %v1358_v53, 0  ;;  %v590_v42 = vunpack.c.l.s4 %v1566_v33  ;;  %vm365_vm4 = vweird.f32 %v1646_v14 }
  0xe2   : > { %v271_v60 = vsel %vm264_vm12, %v267_v16, %v270_v38  ;;  %v448_v45 = vsel %vm1359_vm1, 0, %v1358_v53  ;;  %v433_v50 = vadd.s32 %v1829_v3, %v1826_v49  ;;  %v536_v41 = vmul.u32 %v1877_v9, %v520_v57 }
  0xe3   : > { %v449_v0 = vsub.s32 32, %v448_v45  ;;  %v453_v1 = vsub.s32 4294967266, %v448_v45  ;;  %v272_v52 = vsel %vm261_vm15, nan, %v271_v60  ;;  %vm538_vm5 = vc.u32 %v1934_v58, %v1908_v26 }
  0xe4   : > { %v591_v8 = vunpack.c.0.s8 %v590_v42  ;;  %v813_v5 = vand.u32 3, %v1792_v21  ;;  %vm379_vm6 = vcmp.lt.s32.totalorder %v1648_v15, 0  ;;  %v450_v49 = vshll.u32 %v1872_v7, %v448_v45 }
  0xe5   : > { %v451_v3 = vshrl.u32 %v433_v50, %v449_v0  ;;  %v454_v55 = vadd.s32 127, %v453_v1  ;;  %v540_v44 = vsel %vm538_vm5, %v539_v32, %v1909_v27  ;;  %v1483_v39 = vpop.eup %1482  ;;  %vm372_vm7 = vcmp.eq.s32.totalorder %v367_v47, 2 }
  0xe6   : > { %v463_v2 = vsub.s32 4, %v1865_v61  ;;  %v541_v54 = vadd.s32 %v540_v44, %v536_v41  ;;  %v1961_v9 = vsub.s32 %v591_v8, %v1638_v6  ;;  %v1485_v21 = vpop.eup %1484  ;;  %v373_v63 = vxor.u32 2147483648, %v1483_v39 }
  0xe7   : > { %v452_v11 = vor.u32 %v451_v3, %v450_v49  ;;  %v455_v17 = vshll.u32 %v454_v55, 23  ;;  %vm1964_vm8 = vcmp.lt.s32.totalorder %v160_v4, 256  ;;  %v370_v7 = vxor.u32 2147483648, %v1485_v21 }
  0xe8   : > { %v542_v10 = vadd.s32 536870912, %v541_v54  ;;  %v595_v36 = vrot.slane %v272_v52, %v1961_v9  ;;  %vm815_vm9 = vcmp.eq.s32.totalorder %v813_v5, 0  ;;  %v374_v59 = vsel %vm372_vm7, %v373_v63, %v1485_v21 }
  0xe9   : > { %vm1971_vm10 = vcmp.le.f32.partialorder %v377_v34, 0.7853982  ;;  %v456_v20 = vor.u32 4788187, %v455_v17  ;;  %v817_v24 = vsel %vm815_vm9, %v1912_v28, %v266_v51  ;;  %v916_v4 = vand.u32 3, %v1845_v19 }
  0xea   : > { %v371_v46 = vsel %vm369_vm3, %v1483_v39, %v370_v7  ;;  %v1978_v25 = vshrl.u32 %v542_v10, 30  ;;  %v596_v22 = vcombine.high %v595_v36, %v595_v36  ;;  %v603_v62 = vrot.slane %v595_v36, %v1961_v9 }
  0xeb   : > { %v375_v43 = vsel %vm368_vm2, %v371_v46, %v374_v59  ;;  %v457_v27 = vand.u32 2147483647, %v456_v20  ;;  %v459_v35 = vcvt.s32.f32 %v452_v11  ;;  %vm818_vm11 = vcmp.eq.s32.totalorder %v813_v5, 2 }
  0xec   : > { %v376_v34 = vsel %vm365_vm4, nan, %v375_v43  ;;  %v544_v30 = vshll.u32 %v1978_v25, 30  ;;  %v610_v31 = vrot.slane %v596_v22, %v1961_v9  ;;  %697 = vst.msk [vmem:[%s1987_s30] ss:$2 sm:$0x3] %vm1964_vm8, %v603_v62  ;;  %v820_v19 = vsel %vm818_vm11, %v269_v40, %v1918_v48 }
  0xed   : > { %v460_v47 = vmul.f32 %v459_v35, %v457_v27  ;;  %v611_v37 = vcombine.high %v603_v62, %v603_v62  ;;  %v618_v51 = vrot.slane %v376_v34, %v1961_v9  ;;  %vm918_vm12 = vcmp.eq.s32.totalorder %v916_v4, 0 }
  0xee   : > { %v464_v53 = vsel %vm379_vm6, %v463_v2, %v1865_v61  ;;  %v545_v18 = vsub.s32 %v541_v54, %v544_v30  ;;  %1364 = vst.msk [vmem:[%s1987_s30 + $0x4] ss:$2 sm:$0x3] %vm1964_vm8, %v610_v31  ;;  %vm814_vm13 = vcmp.lt.s32.totalorder %v813_v5, 2  ;;  %v920_v38 = vsel %vm918_vm12, %v1483_v39, %v370_v7 }
  0xef   : > { %v461_v57 = vxor.u32 2147483648, %v460_v47  ;;  %v619_v12 = vcombine.high %v618_v51, %v618_v51  ;;  %v626_v28 = vrot.slane %v618_v51, %v1961_v9  ;;  %1365 = vst.msk [vmem:[%s1987_s30 + $0x8] ss:$2 sm:$0x3] %vm1964_vm8, %v611_v37  ;;  %vm921_vm14 = vcmp.eq.s32.totalorder %v916_v4, 2 }
  0xf0   : > { %v547_v48 = vsub.s32 0, %v545_v18  ;;  %v821_v40 = vsel %vm814_vm13, %v817_v24, %v820_v19  ;;  %vm917_vm0 = vcmp.lt.s32.totalorder %v916_v4, 2  ;;  %v923_v61 = vsel %vm921_vm14, %v373_v63, %v1485_v21 }
  0xf1   : > { %v462_v16 = vsel %vm379_vm6, %v461_v57, %v460_v47  ;;  %v633_v32 = vrot.slane %v619_v12, %v1961_v9  ;;  %v634_v33 = vcombine.high %v626_v28, %v626_v28  ;;  %1366 = vst.msk [vmem:[%s1987_s30 + $0xc] ss:$2 sm:$0x3] %vm1964_vm8, %v626_v28  ;;  %v924_v42 = vsel %vm917_vm0, %v920_v38, %v923_v61 }
  0xf2   : > { %v465_v60 = vsel %vm1971_vm10, %v1648_v15, %v462_v16  ;;  %v466_v45 = vsel %vm1971_vm10, 0, %v464_v53  ;;  %v1361_v50 = vmin.u32 %v547_v48, %v545_v18  ;;  %v822_v0 = vsel %vm261_vm15, nan, %v821_v40 }
  0xf3   : > { %1486 = vcosq.f32 %v465_v60  ;;  %1367 = vst.msk [vmem:[%s1987_s30 + $0x10] ss:$2 sm:$0x3] %vm1964_vm8, %v633_v32  ;;  %1368 = vst.msk [vmem:[%s1987_s30 + $0x14] ss:$2 sm:$0x3] %vm1964_vm8, %v634_v33  ;;  %v1142_v5 = vrot.slane %v822_v0, %v1961_v9  ;;  %v537_v2 = vadd.s32 %v1908_v26, %v1934_v58  ;;  %vm469_vm15 = vweird.f32 %v1648_v15 }
  0xf4   : > { %v925_v1 = vsel %vm365_vm4, nan, %v924_v42  ;;  %1488 = vsinq.f32 %v465_v60  ;;  %v549_v41 = vclz %v1361_v50  ;;  %v470_v52 = vadd.s32 3, %v466_v45 }
  0xf5   : > { %v1165_v49 = vrot.slane %v925_v1, %v1961_v9  ;;  %v1143_v3 = vcombine.high %v1142_v5, %v1142_v5  ;;  %v1150_v55 = vrot.slane %v1142_v5, %v1961_v9  ;;  %v1019_v11 = vand.u32 3, %v466_v45 }
  0xf6   : > { %v1362_v8 = vadd.s32 4294967294, %v549_v41  ;;  %v471_v13 = vand.u32 3, %v470_v52  ;;  %v567_v37 = vsub.s32 4, %v1978_v25  ;;  %vm483_vm9 = vcmp.lt.s32.totalorder %v1659_v29, 0 }
  0xf7   : > { %v1166_v44 = vcombine.high %v1165_v49, %v1165_v49  ;;  %v1173_v14 = vrot.slane %v1165_v49, %v1961_v9  ;;  %v1157_v63 = vrot.slane %v1143_v3, %v1961_v9  ;;  %1391 = vst.msk [vmem:[%s1987_s30 + $0x1] ss:$2 sm:$0x3] %vm1964_vm8, %v1150_v55  ;;  %v1158_v17 = vcombine.high %v1150_v55, %v1150_v55 }
  0xf8   : > { %vm1363_vm1 = vcmp.lt.s32.totalorder %v1362_v8, 0  ;;  %vm473_vm2 = vcmp.eq.s32.totalorder %v471_v13, 0  ;;  %vm476_vm3 = vcmp.eq.s32.totalorder %v471_v13, 2  ;;  %vm1024_vm4 = vcmp.eq.s32.totalorder %v1019_v11, 2 }
  0xf9   : > { %v552_v39 = vsel %vm1363_vm1, 0, %v1362_v8  ;;  %v1180_v7 = vrot.slane %v1166_v44, %v1961_v9  ;;  %v1181_v10 = vcombine.high %v1173_v14, %v1173_v14  ;;  %1394 = vst.msk [vmem:[%s1987_s30 + $0xd] ss:$2 sm:$0x3] %vm1964_vm8, %v1173_v14  ;;  %vm1021_vm5 = vcmp.eq.s32.totalorder %v1019_v11, 0 }
  0xfa   : > { %v553_v54 = vsub.s32 32, %v552_v39  ;;  %v557_v21 = vsub.s32 4294967266, %v552_v39  ;;  %v554_v36 = vshll.u32 %v545_v18, %v552_v39  ;;  %1392 = vst.msk [vmem:[%s1987_s30 + $0x5] ss:$2 sm:$0x3] %vm1964_vm8, %v1157_v63  ;;  %vm472_vm6 = vcmp.lt.s32.totalorder %v471_v13, 2 }
  0xfb   : > { %1393 = vst.msk [vmem:[%s1987_s30 + $0x9] ss:$2 sm:$0x3] %vm1964_vm8, %v1158_v17  ;;  %1395 = vst.msk [vmem:[%s1987_s30 + $0x11] ss:$2 sm:$0x3] %vm1964_vm8, %v1180_v7  ;;  %v568_v15 = vsel %vm483_vm9, %v567_v37, %v1978_v25 }
  0xfc   : > { %v555_v59 = vshrl.u32 %v537_v2, %v553_v54  ;;  %v558_v26 = vadd.s32 127, %v557_v21  ;;  %1396 = vst.msk [vmem:[%s1987_s30 + $0x15] ss:$2 sm:$0x3] %vm1964_vm8, %v1181_v10  ;;  %vm1020_vm7 = vcmp.lt.s32.totalorder %v1019_v11, 2 }
  0xfd   : > { %v1487_v58 = vpop.eup %1486  ;;  %vm482_vm10 = vcmp.le.f32.partialorder %v481_v23, 0.7853982 }
  0xfe   : > { %v1489_v6 = vpop.eup %1488  ;;  %v477_v20 = vxor.u32 2147483648, %v1487_v58  ;;  %v556_v24 = vor.u32 %v555_v59, %v554_v36  ;;  %v559_v4 = vshll.u32 %v558_v26, 23  ;;  %v570_v23 = vsel %vm482_vm10, 0, %v568_v15 }
  0xff   : > { %v474_v46 = vxor.u32 2147483648, %v1489_v6  ;;  %v574_v25 = vadd.s32 3, %v570_v23  ;;  %v1122_v50 = vand.u32 3, %v570_v23 }
 0x100   : > { %v478_v22 = vsel %vm476_vm3, %v477_v20, %v1489_v6  ;;  %v560_v62 = vor.u32 4788187, %v559_v4  ;;  %v1026_v43 = vsel %vm1024_vm4, %v477_v20, %v1489_v6  ;;  %v563_v31 = vcvt.s32.f32 %v556_v24 }
 0x101   : > { %v475_v27 = vsel %vm473_vm2, %v1487_v58, %v474_v46  ;;  %v1023_v35 = vsel %vm1021_vm5, %v1487_v58, %v474_v46  ;;  %v575_v45 = vand.u32 3, %v574_v25  ;;  %vm1127_vm12 = vcmp.eq.s32.totalorder %v1122_v50, 2 }
 0x102   : > { %v479_v34 = vsel %vm472_vm6, %v475_v27, %v478_v22  ;;  %v561_v30 = vand.u32 2147483647, %v560_v62  ;;  %v1027_v19 = vsel %vm1020_vm7, %v1023_v35, %v1026_v43  ;;  %vm1124_vm14 = vcmp.eq.s32.totalorder %v1122_v50, 0 }
 0x103   : > { %v480_v47 = vsel %vm469_vm15, nan, %v479_v34  ;;  %v1028_v51 = vsel %vm469_vm15, nan, %v1027_v19  ;;  %vm580_vm11 = vcmp.eq.s32.totalorder %v575_v45, 2  ;;  %vm577_vm13 = vcmp.eq.s32.totalorder %v575_v45, 0 }
 0x104   : > { %v564_v53 = vmul.f32 %v563_v31, %v561_v30  ;;  %v641_v18 = vrot.slane %v480_v47, %v1961_v9  ;;  %v1188_v38 = vrot.slane %v1028_v51, %v1961_v9  ;;  %vm576_vm0 = vcmp.lt.s32.totalorder %v575_v45, 2 }
 0x105   : > { %vm1123_vm1 = vcmp.lt.s32.totalorder %v1122_v50, 2  ;;  %vm573_vm15 = vweird.f32 %v1659_v29 }
 0x106   : > { %v565_v57 = vxor.u32 2147483648, %v564_v53  ;;  %v642_v12 = vcombine.high %v641_v18, %v641_v18  ;;  %v649_v28 = vrot.slane %v641_v18, %v1961_v9  ;;  %v1189_v48 = vcombine.high %v1188_v38, %v1188_v38 }
 0x107   : > { %v1196_v40 = vrot.slane %v1188_v38, %v1961_v9 }
 0x108   : > { %v566_v61 = vsel %vm483_vm9, %v565_v57, %v564_v53  ;;  %v656_v16 = vrot.slane %v642_v12, %v1961_v9  ;;  %v657_v32 = vcombine.high %v649_v28, %v649_v28  ;;  %1369 = vst.msk [vmem:[%s1987_s30 + $0x18] ss:$2 sm:$0x3] %vm1964_vm8, %v649_v28  ;;  %v1203_v33 = vrot.slane %v1189_v48, %v1961_v9 }
 0x109   : > { %v569_v42 = vsel %vm482_vm10, %v1659_v29, %v566_v61  ;;  %v1204_v60 = vcombine.high %v1196_v40, %v1196_v40  ;;  %1397 = vst.msk [vmem:[%s1987_s30 + $0x19] ss:$2 sm:$0x3] %vm1964_vm8, %v1196_v40 }
 0x10a   : > { %1490 = vcosq.f32 %v569_v42  ;;  %1370 = vst.msk [vmem:[%s1987_s30 + $0x1c] ss:$2 sm:$0x3] %vm1964_vm8, %v656_v16  ;;  %1371 = vst.msk [vmem:[%s1987_s30 + $0x20] ss:$2 sm:$0x3] %vm1964_vm8, %v657_v32 }
 0x10b   : > { %1398 = vst.msk [vmem:[%s1987_s30 + $0x1d] ss:$2 sm:$0x3] %vm1964_vm8, %v1203_v33  ;;  %1492 = vsinq.f32 %v569_v42  ;;  %1399 = vst.msk [vmem:[%s1987_s30 + $0x21] ss:$2 sm:$0x3] %vm1964_vm8, %v1204_v60 }
 0x114   : > { %v1491_v0 = vpop.eup %1490 }
 0x115   : > { %v1493_v1 = vpop.eup %1492  ;;  %v581_v41 = vxor.u32 2147483648, %v1491_v0 }
 0x116   : > { %v578_v52 = vxor.u32 2147483648, %v1493_v1 }
 0x117   : > { %v582_v8 = vsel %vm580_vm11, %v581_v41, %v1493_v1  ;;  %v1129_v5 = vsel %vm1127_vm12, %v581_v41, %v1493_v1 }
 0x118   : > { %v579_v49 = vsel %vm577_vm13, %v1491_v0, %v578_v52  ;;  %v1126_v3 = vsel %vm1124_vm14, %v1491_v0, %v578_v52 }
 0x119   : > { %v583_v55 = vsel %vm576_vm0, %v579_v49, %v582_v8  ;;  %v1130_v44 = vsel %vm1123_vm1, %v1126_v3, %v1129_v5 }
 0x11a   : > { %v584_v13 = vsel %vm573_vm15, nan, %v583_v55  ;;  %v1131_v39 = vsel %vm573_vm15, nan, %v1130_v44 }
 0x11b   : > { %v664_v14 = vrot.slane %v584_v13, %v1961_v9  ;;  %v1211_v2 = vrot.slane %v1131_v39, %v1961_v9 }
 0x11d   : > { %v665_v54 = vcombine.high %v664_v14, %v664_v14  ;;  %v672_v29 = vrot.slane %v664_v14, %v1961_v9  ;;  %v1212_v21 = vcombine.high %v1211_v2, %v1211_v2  ;;  %v1219_v63 = vrot.slane %v1211_v2, %v1961_v9 }
 0x11f   : > { %v679_v11 = vrot.slane %v665_v54, %v1961_v9  ;;  %v680_v17 = vcombine.high %v672_v29, %v672_v29  ;;  %1372 = vst.msk [vmem:[%s1987_s30 + $0x24] ss:$2 sm:$0x3] %vm1964_vm8, %v672_v29  ;;  %v1226_v7 = vrot.slane %v1212_v21, %v1961_v9  ;;  %v1227_v10 = vcombine.high %v1219_v63, %v1219_v63 }
 0x120   : > { %1400 = vst.msk [vmem:[%s1987_s30 + $0x25] ss:$2 sm:$0x3] %vm1964_vm8, %v1219_v63 }
 0x121   : > { %1373 = vst.msk [vmem:[%s1987_s30 + $0x28] ss:$2 sm:$0x3] %vm1964_vm8, %v679_v11  ;;  %1374 = vst.msk [vmem:[%s1987_s30 + $0x2c] ss:$2 sm:$0x3] %vm1964_vm8, %v680_v17 }
 0x122   : > { %1401 = vst.msk [vmem:[%s1987_s30 + $0x29] ss:$2 sm:$0x3] %vm1964_vm8, %v1226_v7  ;;  %1402 = vst.msk [vmem:[%s1987_s30 + $0x2d] ss:$2 sm:$0x3] %vm1964_vm8, %v1227_v10 }
 0x123   : > { %1507 = shalt.err (!%p1504_p3)
}
 0x124   : > { %s1508_s21 = scalar_lea.hbm %s2098_s7, 768  ;;  %s1512_s24 = scalar_lea.hbm %s2167_s2, 1536 }
 0x125   : > { %p1509_p4 = scmp.ne.s32.totalorder %s2098_s7, %s1508_s21  ;;  %p1513_p9 = scmp.lt.u32.totalorder %s2098_s7, %s2167_s2 }
 0x126   : > { %p1514_p10 = scmp.lt.u32.totalorder %s1512_s24, %s1508_s21  ;;  %p1516_p12 = scmp.lt.u32.totalorder %s1508_s21, %s2098_s7 }
 0x127   : > { %p1510_p7 = pnand %p1509_p4, %p1623_p5 }
 0x128   : > { %p1515_p11 = por %p1514_p10, %p1513_p9 }
 0x129   : > { %p1511_p8 = pneg %p1510_p7 }
 0x12a   : > { %p1517_p13 = por %p1516_p12, %p1515_p11 }
 0x12c   : > { %p1518_p0 = pnand %p1517_p13, %p1511_p8 }
 0x12e   : > { %1521 = shalt.err (!%p1518_p0)
}
 0x12f   : > { %s1568_s27 = smov 64   ;;  %s1569_s28 = smov 4  }
 0x130   : > { %1427 = dma.vmem_to_hbm [thread:$0]  (%p1623_p5), %s2108_s4, 768, %s2098_s7, %s2124_s8, %s1568_s27, %s1568_s27, %s1569_s28  }
 0x131 PF: > { %p1433_p1 = scmp.ge.s32.totalorder %s1556_s12, 2  ;;  %s1294_s29 = sand.u32 1, %s1544_s9  }
 0x132   : > { %s1295_s30 = scalar_lea.sflag [#allocation3], %s1294_s29 }
 0x133   : > { %p1430_p2 = pnand %p1433_p1, %p1627_p6 }
 0x135   : > { %1539 = dma.done.wait (!%p1430_p2), %s1295_s30, 768  }
 0x136   : > { %1541 = vsyncadd (!%p1430_p2), %s1295_s30, 4294966528  ;;  %p12_p3 = scmp.ge.s32.totalorder %s1610_s15, 4   ;;  %s2178_s9 = smov %s1548_s10 }
 0x137   : > { %s2179_s10 = smov %s1552_s11  ;;  %s2180_s11 = smov %s1621_s18 }
 0x138   : > { %s2181_s12 = smov %s1610_s15  ;;  %14 = sbr.rel (!%p12_p3) target bundleno = 3 (0x3), region = 86 }
 0x13f   :  { %1300 = vsyncpa [#allocation3], 1 }
 0x140   :  { %1302 = vsyncpa [#allocation3 + $0x1], 1 }

</bundles_post_ra>
